<compile_context>
chip_gen: v7x
topology: tpu7x:2x2x1
jax: 0.10.0
libtpu: 0.0.40
codegen_flags: <defaults>
</compile_context>

<pallas_src>
import functools

import jax
import jax.numpy as jnp
from jax import lax
from jax.experimental import pallas as pl
from jax.experimental.pallas import tpu as pltpu


LN_EPS = 1e-5          # PyTorch nn.LayerNorm default
_LANE = 128            # lane width
_ROW_GRANULE = 16      # row-tile granule (bf16 sublane pack)


def _round_up(x, m):
    return ((x + m - 1) // m) * m


def _vmem_capacity_bytes():
    try:
        return int(pltpu.get_tpu_info().vmem_capacity_bytes)
    except Exception:
        return 64 << 20  # conservative fallback: v7x per-TensorCore VMEM


def _pick_tiles(rows, dim, dim_p, x_isz, out_isz, vmem_cap):
    """Pick (row_tile, k_tile, resident) from the chip's VMEM capacity."""
    budget = int(vmem_cap * 0.80)

    def resident_bytes(rt):
        # W.T counted double-buffered (conservative; pl.Buffered(1) halves it).
        return (2 * dim * dim_p * 2
                + 2 * rt * dim * x_isz
                + 2 * rt * dim_p * out_isz
                + rt * dim_p * 4              # f32 dot-result headroom
                + 6 * dim_p * 4)

    def stream_bytes(rt, kt):
        return (2 * kt * dim_p * 2            # W.T slab, double-buffered
                + 2 * rt * kt * x_isz
                + 2 * rt * dim_p * out_isz
                + rt * dim_p * 4              # f32 accumulator scratch
                + 6 * dim_p * 4)

    if rows <= 256:
        # Split small inputs into two row tiles so both v7x TCs get work.
        rt_small = _round_up(max((rows + 1) // 2, 8), _ROW_GRANULE)
        row_cands = [min(rt_small, _round_up(rows, _ROW_GRANULE))]
    elif vmem_cap >= (96 << 20):
        row_cands = [512, 256, 128, 64]       # v5e/v6e: big rows when streaming
    else:
        row_cands = [256, 128, 64]            # v7x: keep working set small

    # 1) Keep W.T fully resident whenever it fits (one HBM pass over W).
    for rt in row_cands:
        if resident_bytes(rt) <= budget:
            return rt, dim, True
    # 2) Stream the contraction dim in k_tile slabs.
    for rt in row_cands:
        for kt in (2048, 1024, 512, 256, 128):
            if kt < dim_p and dim_p % kt == 0 and stream_bytes(rt, kt) <= budget:
                return rt, kt, False
    # 3) Last resort: smallest row tile, 128-wide K slabs.
    rt = row_cands[-1]
    if dim_p == _LANE:
        return rt, dim, True
    return rt, _LANE, False


def _ln_epilogue(y, gamma, beta, true_dim, out_dtype):
    """One-pass LayerNorm stats: s1/s2 reductions are independent (2 XLUs)."""
    inv_d = 1.0 / float(true_dim)
    s1 = jnp.sum(y, axis=-1, keepdims=True)
    s2 = jnp.sum(y * y, axis=-1, keepdims=True)
    mean = s1 * inv_d
    var = jnp.maximum(s2 * inv_d - mean * mean, 0.0)
    y_hat = (y - mean) * lax.rsqrt(var + LN_EPS)          # EUP rsqrt
    return (y_hat * gamma + beta).astype(out_dtype)


def transform_resident_kernel(x_ref, wt_ref, b_ref, g_ref, be_ref, o_ref,
                              *, true_dim):
    """n_k == 1 fast path: y = x @ W.T + b, LayerNorm, write o_ref directly."""
    x = x_ref[...].astype(jnp.bfloat16)                    # in-kernel cast (VPU)
    y = jnp.dot(x, wt_ref[...], preferred_element_type=jnp.float32)
    y = y + b_ref[...].astype(jnp.float32)
    o_ref[...] = _ln_epilogue(y,
                              g_ref[...].astype(jnp.float32),
                              be_ref[...].astype(jnp.float32),
                              true_dim, o_ref.dtype)


def transform_stream_kernel(x_ref, wt_ref, b_ref, g_ref, be_ref, o_ref,
                            acc_ref, *, true_dim):
    """K-streamed path: bias-initialized f32 accumulator + LN epilogue."""
    k = pl.program_id(1)

    @pl.when(k == 0)
    def _():
        # Fold bias into the accumulator init (saves an epilogue-wide add).
        acc_ref[...] = jnp.broadcast_to(b_ref[...].astype(jnp.float32),
                                        acc_ref.shape)

    acc_ref[...] += jnp.dot(x_ref[...].astype(jnp.bfloat16), wt_ref[...],
                            preferred_element_type=jnp.float32)

    @pl.when(k == pl.num_programs(1) - 1)
    def _():
        o_ref[...] = _ln_epilogue(acc_ref[...],
                                  g_ref[...].astype(jnp.float32),
                                  be_ref[...].astype(jnp.float32),
                                  true_dim, o_ref.dtype)


def transform_forward(x, weight, bias, gamma, beta):
    """x: (..., dim); weight: (dim, dim) as in nn.Linear (out, in)."""
    orig_shape = x.shape
    dim = orig_shape[-1]
    rows = 1
    for s in orig_shape[:-1]:
        rows *= s

    out_dtype = x.dtype
    dim_p = max(_round_up(dim, _LANE), _LANE)  # lane-dense output width

    vmem_cap = _vmem_capacity_bytes()
    x_isz = jnp.dtype(x.dtype).itemsize
    out_isz = jnp.dtype(out_dtype).itemsize
    row_tile, k_tile, resident = _pick_tiles(rows, dim, dim_p,
                                             x_isz, out_isz, vmem_cap)

    # ---- operand prep (x stays in its input dtype; bf16 cast happens in-kernel)
    x2d = x.reshape(rows, dim)
    padded_rows = _round_up(rows, row_tile)

    # W: (out, in) -> W.T (in, out), bf16 once; zero-pad the out (lane) axis so
    # the output is lane-dense.  Padded lanes stay exactly zero (bias/gamma/
    # beta zero-padded), so LN stats just divide by the true dim.
    wt = weight.T.astype(jnp.bfloat16)
    if dim_p != dim:
        wt = jnp.pad(wt, ((0, 0), (0, dim_p - dim)))

    k_extent = dim if resident else dim_p
    if not resident and k_extent != dim:
        wt = jnp.pad(wt, ((0, k_extent - dim), (0, 0)))

    pad_r = padded_rows - rows
    pad_k = k_extent - dim
    if pad_r or pad_k:
        x2d = jnp.pad(x2d, ((0, pad_r), (0, pad_k)))

    def _vec(p):
        v = p.reshape(1, dim).astype(jnp.float32)
        if dim_p != dim:
            v = jnp.pad(v, ((0, 0), (0, dim_p - dim)))
        return v

    b2d, g2d, be2d = _vec(bias), _vec(gamma), _vec(beta)

    n_row = padded_rows // row_tile

    def build_call(single_buffer_const):
        def const_spec(shape, imap):
            # Constant-index operands don't need double-buffering.
            if single_buffer_const:
                return pl.BlockSpec(shape, imap, pipeline_mode=pl.Buffered(1))
            return pl.BlockSpec(shape, imap)

        if resident:
            grid = (n_row,)
            in_specs = [
                pl.BlockSpec((row_tile, k_extent), lambda i: (i, 0)),   # x
                const_spec((k_extent, dim_p), lambda i: (0, 0)),        # W.T resident
                const_spec((1, dim_p), lambda i: (0, 0)),               # bias
                const_spec((1, dim_p), lambda i: (0, 0)),               # gamma
                const_spec((1, dim_p), lambda i: (0, 0)),               # beta
            ]
            out_specs = pl.BlockSpec((row_tile, dim_p), lambda i: (i, 0))
            scratch = []
            kernel = functools.partial(transform_resident_kernel, true_dim=dim)
            semantics = ("parallel",)
            used = (2 * k_extent * dim_p * 2 + 2 * row_tile * k_extent * x_isz
                    + 2 * row_tile * dim_p * out_isz + row_tile * dim_p * 4
                    + 6 * dim_p * 4)
        else:
            grid = (n_row, k_extent // k_tile)
            in_specs = [
                pl.BlockSpec((row_tile, k_tile), lambda i, k: (i, k)),  # x
                pl.BlockSpec((k_tile, dim_p), lambda i, k: (k, 0)),     # W.T slab
                const_spec((1, dim_p), lambda i, k: (0, 0)),            # bias
                const_spec((1, dim_p), lambda i, k: (0, 0)),            # gamma
                const_spec((1, dim_p), lambda i, k: (0, 0)),            # beta
            ]
            out_specs = pl.BlockSpec((row_tile, dim_p), lambda i, k: (i, 0))
            scratch = [pltpu.VMEM((row_tile, dim_p), jnp.float32)]
            kernel = functools.partial(transform_stream_kernel, true_dim=dim)
            semantics = ("parallel", "arbitrary")
            used = (2 * k_tile * dim_p * 2 + 2 * row_tile * k_tile * x_isz
                    + 2 * row_tile * dim_p * out_isz + row_tile * dim_p * 4
                    + 6 * dim_p * 4)

        vmem_limit = int(min(max(used + (4 << 20), 32 << 20),
                             int(vmem_cap * 0.9)))

        return pl.pallas_call(
            kernel,
            out_shape=jax.ShapeDtypeStruct((padded_rows, dim_p), out_dtype),
            grid_spec=pltpu.PrefetchScalarGridSpec(
                num_scalar_prefetch=0,
                grid=grid,
                in_specs=in_specs,
                out_specs=out_specs,
                scratch_shapes=scratch,
            ),
            compiler_params=pltpu.CompilerParams(
                dimension_semantics=semantics,
                vmem_limit_bytes=vmem_limit,
            ),
        )

    try:
        out2d = build_call(True)(x2d, wt, b2d, g2d, be2d)
        out2d = jax.block_until_ready(out2d)
    except Exception:
        # pl.Buffered(1) not supported by this runtime: fall back to default
        # double-buffering for the constant-index operands (same semantics).
        out2d = build_call(False)(x2d, wt, b2d, g2d, be2d)

    out2d = out2d[:rows, :dim]
    return out2d.reshape(orig_shape)


def reference_forward(x, weight, bias, gamma, beta):
    """Pure-JAX f32 reference mirroring the PyTorch module."""
    y = jnp.einsum("...i,oi->...o", x, weight) + bias
    mean = jnp.mean(y, axis=-1, keepdims=True)
    var = jnp.mean((y - mean) ** 2, axis=-1, keepdims=True)
    return (y - mean) / jnp.sqrt(var + LN_EPS) * gamma + beta


if __name__ == "__main__":
    # Small shapes consistent with the module: x of shape (batch, seq, dim)
    batch, seq, dim = 2, 8, 32

    key = jax.random.PRNGKey(0)
    kx, kw, kb = jax.random.split(key, 3)

    x = jax.random.normal(kx, (batch, seq, dim), dtype=jnp.float32)

    # Deterministic parameter init (nn.Linear(dim,dim) + nn.LayerNorm(dim))
    bound = 1.0 / (dim ** 0.5)
    weight = jax.random.uniform(kw, (dim, dim), jnp.float32, -bound, bound)  # (out, in)
    bias = jax.random.uniform(kb, (dim,), jnp.float32, -bound, bound)
    gamma = jnp.ones((dim,), jnp.float32)
    beta = jnp.zeros((dim,), jnp.float32)

    out = transform_forward(x, weight, bias, gamma, beta)
    out = jax.block_until_ready(out)

    ref = reference_forward(x, weight, bias, gamma, beta)
    assert out.shape == (batch, seq, dim)
    # bf16 MXU operands with f32 accumulation: relax tolerance vs f32 reference.
    assert jnp.allclose(out, ref, atol=3e-2, rtol=3e-2), float(
        jnp.max(jnp.abs(out - ref))
    )

    print("KERNEL_OK")
</pallas_src>

<mosaic_0001>
module attributes {stable_mosaic.version = 11 : i64} {
  func.func @transform_resident_kernel(%arg0: i32, %arg1: memref<16x32xf32, #tpu.memory_space<vmem>>, %arg2: memref<32x128xbf16, #tpu.memory_space<vmem>>, %arg3: memref<1x128xf32, #tpu.memory_space<vmem>>, %arg4: memref<1x128xf32, #tpu.memory_space<vmem>>, %arg5: memref<1x128xf32, #tpu.memory_space<vmem>>, %arg6: memref<16x128xf32, #tpu.memory_space<vmem>>) attributes {dimension_semantics = [#tpu.dimension_semantics<parallel>], iteration_bounds = array<i64: 1>, scalar_prefetch = 0 : i64, scratch_operands = 0 : i64, tpu.core_type = #tpu.core_type<tc>, window_params = [{transform_indices = @transform_0, window_bounds = array<i64: 16, 32>}, {pipeline_mode = #tpu.pipeline_mode<synchronous>, transform_indices = @transform_1, window_bounds = array<i64: 32, 128>}, {pipeline_mode = #tpu.pipeline_mode<synchronous>, transform_indices = @transform_2, window_bounds = array<i64: 1, 128>}, {pipeline_mode = #tpu.pipeline_mode<synchronous>, transform_indices = @transform_3, window_bounds = array<i64: 1, 128>}, {pipeline_mode = #tpu.pipeline_mode<synchronous>, transform_indices = @transform_4, window_bounds = array<i64: 1, 128>}, {transform_indices = @transform_5, window_bounds = array<i64: 16, 128>}]} {
    %c0 = arith.constant 0 : index
    %c0_0 = arith.constant 0 : index
    %0 = vector.load %arg1[%c0, %c0_0] : memref<16x32xf32, #tpu.memory_space<vmem>>, vector<16x32xf32>
    %1 = arith.truncf %0 : vector<16x32xf32> to vector<16x32xbf16>
    %c0_1 = arith.constant 0 : index
    %c0_2 = arith.constant 0 : index
    %2 = vector.load %arg2[%c0_1, %c0_2] : memref<32x128xbf16, #tpu.memory_space<vmem>>, vector<32x128xbf16>
    %cst = arith.constant dense<0.000000e+00> : vector<16x128xf32>
    %3 = tpu.matmul %1, %2, %cst {dimension_numbers = #tpu.dot_dimension_numbers<[1], [0], [0], [1], [0, 0, 1, 1], [], []>} : vector<16x32xbf16>, vector<32x128xbf16>, vector<16x128xf32> -> vector<16x128xf32>
    %c0_3 = arith.constant 0 : index
    %c0_4 = arith.constant 0 : index
    %4 = vector.load %arg3[%c0_3, %c0_4] : memref<1x128xf32, #tpu.memory_space<vmem>>, vector<1x128xf32>
    %5 = vector.broadcast %4 : vector<1x128xf32> to vector<16x128xf32>
    %6 = arith.addf %3, %5 : vector<16x128xf32>
    %c0_5 = arith.constant 0 : index
    %c0_6 = arith.constant 0 : index
    %7 = vector.load %arg4[%c0_5, %c0_6] : memref<1x128xf32, #tpu.memory_space<vmem>>, vector<1x128xf32>
    %c0_7 = arith.constant 0 : index
    %c0_8 = arith.constant 0 : index
    %8 = vector.load %arg5[%c0_7, %c0_8] : memref<1x128xf32, #tpu.memory_space<vmem>>, vector<1x128xf32>
    %cst_9 = arith.constant dense<0.000000e+00> : vector<16xf32>
    %9 = vector.multi_reduction <add>, %6, %cst_9 [1] : vector<16x128xf32> to vector<16xf32>
    %10 = vector.shape_cast %9 : vector<16xf32> to vector<16x1xf32>
    %11 = arith.mulf %6, %6 : vector<16x128xf32>
    %cst_10 = arith.constant dense<0.000000e+00> : vector<16xf32>
    %12 = vector.multi_reduction <add>, %11, %cst_10 [1] : vector<16x128xf32> to vector<16xf32>
    %13 = vector.shape_cast %12 : vector<16xf32> to vector<16x1xf32>
    %cst_11 = arith.constant 3.125000e-02 : f32
    %14 = vector.broadcast %cst_11 : f32 to vector<16x1xf32>
    %15 = arith.mulf %10, %14 : vector<16x1xf32>
    %cst_12 = arith.constant 3.125000e-02 : f32
    %16 = vector.broadcast %cst_12 : f32 to vector<16x1xf32>
    %17 = arith.mulf %13, %16 : vector<16x1xf32>
    %18 = arith.mulf %15, %15 : vector<16x1xf32>
    %19 = arith.subf %17, %18 : vector<16x1xf32>
    %cst_13 = arith.constant 0.000000e+00 : f32
    %20 = vector.broadcast %cst_13 : f32 to vector<16x1xf32>
    %21 = arith.maximumf %19, %20 : vector<16x1xf32>
    %22 = vector.broadcast %15 : vector<16x1xf32> to vector<16x128xf32>
    %23 = arith.subf %6, %22 : vector<16x128xf32>
    %cst_14 = arith.constant 9.99999974E-6 : f32
    %24 = vector.broadcast %cst_14 : f32 to vector<16x1xf32>
    %25 = arith.addf %21, %24 : vector<16x1xf32>
    %26 = math.rsqrt %25 : vector<16x1xf32>
    %27 = vector.broadcast %26 : vector<16x1xf32> to vector<16x128xf32>
    %28 = arith.mulf %23, %27 : vector<16x128xf32>
    %29 = vector.broadcast %7 : vector<1x128xf32> to vector<16x128xf32>
    %30 = arith.mulf %28, %29 : vector<16x128xf32>
    %31 = vector.broadcast %8 : vector<1x128xf32> to vector<16x128xf32>
    %32 = arith.addf %30, %31 : vector<16x128xf32>
    %c0_15 = arith.constant 0 : index
    %c0_16 = arith.constant 0 : index
    %33 = vector.load %arg6[%c0_15, %c0_16] : memref<16x128xf32, #tpu.memory_space<vmem>>, vector<16x128xf32>
    tpu.vector_store %arg6[%c0_15, %c0_16], %32 {strides = array<i32>} : memref<16x128xf32, #tpu.memory_space<vmem>>, vector<16x128xf32>,
    return
  }
  func.func @transform_0(%arg0: i32) -> (i32, i32) {
    %c0_i32 = arith.constant 0 : i32
    %c0_i32_0 = arith.constant 0 : i32
    return %arg0, %c0_i32 : i32, i32
  }
  func.func @transform_1(%arg0: i32) -> (i32, i32) {
    %c0_i32 = arith.constant 0 : i32
    %c0_i32_0 = arith.constant 0 : i32
    %c0_i32_1 = arith.constant 0 : i32
    return %c0_i32, %c0_i32_0 : i32, i32
  }
  func.func @transform_2(%arg0: i32) -> (i32, i32) {
    %c0_i32 = arith.constant 0 : i32
    %c0_i32_0 = arith.constant 0 : i32
    %c0_i32_1 = arith.constant 0 : i32
    return %c0_i32, %c0_i32_0 : i32, i32
  }
  func.func @transform_3(%arg0: i32) -> (i32, i32) {
    %c0_i32 = arith.constant 0 : i32
    %c0_i32_0 = arith.constant 0 : i32
    %c0_i32_1 = arith.constant 0 : i32
    return %c0_i32, %c0_i32_0 : i32, i32
  }
  func.func @transform_4(%arg0: i32) -> (i32, i32) {
    %c0_i32 = arith.constant 0 : i32
    %c0_i32_0 = arith.constant 0 : i32
    %c0_i32_1 = arith.constant 0 : i32
    return %c0_i32, %c0_i32_0 : i32, i32
  }
  func.func @transform_5(%arg0: i32) -> (i32, i32) {
    %c0_i32 = arith.constant 0 : i32
    %c0_i32_0 = arith.constant 0 : i32
    return %arg0, %c0_i32 : i32, i32
  }
}

module attributes {stable_mosaic.version = 11 : i64} {
  func.func @transform_resident_kernel(%arg0: i32, %arg1: memref<16x32xf32, #tpu.memory_space<vmem>>, %arg2: memref<32x128xbf16, #tpu.memory_space<vmem>>, %arg3: memref<1x128xf32, #tpu.memory_space<vmem>>, %arg4: memref<1x128xf32, #tpu.memory_space<vmem>>, %arg5: memref<1x128xf32, #tpu.memory_space<vmem>>, %arg6: memref<16x128xf32, #tpu.memory_space<vmem>>) attributes {dimension_semantics = [#tpu.dimension_semantics<parallel>], iteration_bounds = array<i64: 1>, scalar_prefetch = 0 : i64, scratch_operands = 0 : i64, tpu.core_type = #tpu.core_type<tc>, window_params = [{transform_indices = @transform_0, window_bounds = array<i64: 16, 32>}, {pipeline_mode = #tpu.pipeline_mode<synchronous>, transform_indices = @transform_1, window_bounds = array<i64: 32, 128>}, {pipeline_mode = #tpu.pipeline_mode<synchronous>, transform_indices = @transform_2, window_bounds = array<i64: 1, 128>}, {pipeline_mode = #tpu.pipeline_mode<synchronous>, transform_indices = @transform_3, window_bounds = array<i64: 1, 128>}, {pipeline_mode = #tpu.pipeline_mode<synchronous>, transform_indices = @transform_4, window_bounds = array<i64: 1, 128>}, {transform_indices = @transform_5, window_bounds = array<i64: 16, 128>}]} {
    %c0 = arith.constant 0 : index
    %c0_0 = arith.constant 0 : index
    %0 = vector.load %arg1[%c0, %c0_0] : memref<16x32xf32, #tpu.memory_space<vmem>>, vector<16x32xf32>
    %1 = arith.truncf %0 : vector<16x32xf32> to vector<16x32xbf16>
    %c0_1 = arith.constant 0 : index
    %c0_2 = arith.constant 0 : index
    %2 = vector.load %arg2[%c0_1, %c0_2] : memref<32x128xbf16, #tpu.memory_space<vmem>>, vector<32x128xbf16>
    %cst = arith.constant dense<0.000000e+00> : vector<16x128xf32>
    %3 = tpu.matmul %1, %2, %cst {dimension_numbers = #tpu.dot_dimension_numbers<[1], [0], [0], [1], [0, 0, 1, 1], [], []>} : vector<16x32xbf16>, vector<32x128xbf16>, vector<16x128xf32> -> vector<16x128xf32>
    %c0_3 = arith.constant 0 : index
    %c0_4 = arith.constant 0 : index
    %4 = vector.load %arg3[%c0_3, %c0_4] : memref<1x128xf32, #tpu.memory_space<vmem>>, vector<1x128xf32>
    %5 = vector.broadcast %4 : vector<1x128xf32> to vector<16x128xf32>
    %6 = arith.addf %3, %5 : vector<16x128xf32>
    %c0_5 = arith.constant 0 : index
    %c0_6 = arith.constant 0 : index
    %7 = vector.load %arg4[%c0_5, %c0_6] : memref<1x128xf32, #tpu.memory_space<vmem>>, vector<1x128xf32>
    %c0_7 = arith.constant 0 : index
    %c0_8 = arith.constant 0 : index
    %8 = vector.load %arg5[%c0_7, %c0_8] : memref<1x128xf32, #tpu.memory_space<vmem>>, vector<1x128xf32>
    %cst_9 = arith.constant dense<0.000000e+00> : vector<16xf32>
    %9 = vector.multi_reduction <add>, %6, %cst_9 [1] : vector<16x128xf32> to vector<16xf32>
    %10 = vector.shape_cast %9 : vector<16xf32> to vector<16x1xf32>
    %11 = arith.mulf %6, %6 : vector<16x128xf32>
    %cst_10 = arith.constant dense<0.000000e+00> : vector<16xf32>
    %12 = vector.multi_reduction <add>, %11, %cst_10 [1] : vector<16x128xf32> to vector<16xf32>
    %13 = vector.shape_cast %12 : vector<16xf32> to vector<16x1xf32>
    %cst_11 = arith.constant 3.125000e-02 : f32
    %14 = vector.broadcast %cst_11 : f32 to vector<16x1xf32>
    %15 = arith.mulf %10, %14 : vector<16x1xf32>
    %cst_12 = arith.constant 3.125000e-02 : f32
    %16 = vector.broadcast %cst_12 : f32 to vector<16x1xf32>
    %17 = arith.mulf %13, %16 : vector<16x1xf32>
    %18 = arith.mulf %15, %15 : vector<16x1xf32>
    %19 = arith.subf %17, %18 : vector<16x1xf32>
    %cst_13 = arith.constant 0.000000e+00 : f32
    %20 = vector.broadcast %cst_13 : f32 to vector<16x1xf32>
    %21 = arith.maximumf %19, %20 : vector<16x1xf32>
    %22 = vector.broadcast %15 : vector<16x1xf32> to vector<16x128xf32>
    %23 = arith.subf %6, %22 : vector<16x128xf32>
    %cst_14 = arith.constant 9.99999974E-6 : f32
    %24 = vector.broadcast %cst_14 : f32 to vector<16x1xf32>
    %25 = arith.addf %21, %24 : vector<16x1xf32>
    %26 = math.rsqrt %25 : vector<16x1xf32>
    %27 = vector.broadcast %26 : vector<16x1xf32> to vector<16x128xf32>
    %28 = arith.mulf %23, %27 : vector<16x128xf32>
    %29 = vector.broadcast %7 : vector<1x128xf32> to vector<16x128xf32>
    %30 = arith.mulf %28, %29 : vector<16x128xf32>
    %31 = vector.broadcast %8 : vector<1x128xf32> to vector<16x128xf32>
    %32 = arith.addf %30, %31 : vector<16x128xf32>
    %c0_15 = arith.constant 0 : index
    %c0_16 = arith.constant 0 : index
    %33 = vector.load %arg6[%c0_15, %c0_16] : memref<16x128xf32, #tpu.memory_space<vmem>>, vector<16x128xf32>
    tpu.vector_store %arg6[%c0_15, %c0_16], %32 {strides = array<i32>} : memref<16x128xf32, #tpu.memory_space<vmem>>, vector<16x128xf32>,
    return
  }
  func.func @transform_0(%arg0: i32) -> (i32, i32) {
    %c0_i32 = arith.constant 0 : i32
    %c0_i32_0 = arith.constant 0 : i32
    return %arg0, %c0_i32 : i32, i32
  }
  func.func @transform_1(%arg0: i32) -> (i32, i32) {
    %c0_i32 = arith.constant 0 : i32
    %c0_i32_0 = arith.constant 0 : i32
    %c0_i32_1 = arith.constant 0 : i32
    return %c0_i32, %c0_i32_0 : i32, i32
  }
  func.func @transform_2(%arg0: i32) -> (i32, i32) {
    %c0_i32 = arith.constant 0 : i32
    %c0_i32_0 = arith.constant 0 : i32
    %c0_i32_1 = arith.constant 0 : i32
    return %c0_i32, %c0_i32_0 : i32, i32
  }
  func.func @transform_3(%arg0: i32) -> (i32, i32) {
    %c0_i32 = arith.constant 0 : i32
    %c0_i32_0 = arith.constant 0 : i32
    %c0_i32_1 = arith.constant 0 : i32
    return %c0_i32, %c0_i32_0 : i32, i32
  }
  func.func @transform_4(%arg0: i32) -> (i32, i32) {
    %c0_i32 = arith.constant 0 : i32
    %c0_i32_0 = arith.constant 0 : i32
    %c0_i32_1 = arith.constant 0 : i32
    return %c0_i32, %c0_i32_0 : i32, i32
  }
  func.func @transform_5(%arg0: i32) -> (i32, i32) {
    %c0_i32 = arith.constant 0 : i32
    %c0_i32_0 = arith.constant 0 : i32
    return %arg0, %c0_i32 : i32, i32
  }
}

</mosaic_0001>

<bundles_post_ra>
// kernel: tpu_custom_call.1
= control target key start
LH: loop header
LB: loop body
LE: loop exit
PB: predicated region body
PF: predicated region fallthrough
CT: control target
= control target key end

     0   :  { %10 = vsyncpa [#allocation3], 0  ;;  %s381_s0 = inlined_call_operand.hbm [shape: f32[16,32], index: 0, kind: input, shape index: {}]   ;;  %s382_s1 = inlined_call_operand.hbm [shape: bf16[32,128], index: 1, kind: input, shape index: {}]   ;;  %s383_s2 = inlined_call_operand.vmem [shape: f32[1,128], index: 2, kind: input, shape index: {}]   ;;  %s384_s3 = inlined_call_operand.vmem [shape: f32[1,128], index: 3, kind: input, shape index: {}]   ;;  %s385_s4 = inlined_call_operand.vmem [shape: f32[1,128], index: 4, kind: input, shape index: {}]   ;;  %s386_s5 = inlined_call_operand.hbm [shape: f32[16,128], index: 5, kind: output, shape index: {}]  }
   0x1   :  { %11 = vsyncpa [#allocation6], 0 }
   0x2   :  { %12 = vsyncpa [#allocation4], 0  ;;  %s291_s18 = smov [#allocation2]   ;;  %s219_s22 = scalar_lea.hbm %s381_s0, 256 }
   0x3   :  { %s18_s19 = sshll.u32 %s291_s18, 4  ;;  %p220_p0 = scmp.ne.s32.totalorder %s381_s0, %s219_s22  ;;  %s19_s19 = int_to_ptr.vmem [resolvable:$true] %s18_s19 }
   0x4   :  { %p223_p1 = scmp.lt.u32.totalorder %s219_s22, %s381_s0 }
   0x6   :  { %p225_p2 = pnand %p223_p1, %p220_p0 }
   0x8   :  { %228 = shalt.err (!%p225_p2)
}
   0x9   :  { %s229_s27 = scalar_lea.vmem %s19_s19, 256  ;;  %p234_p4 = scmp.lt.s32.totalorder %s19_s19, %s19_s19 }
   0xa   :  { %p230_p3 = scmp.ne.s32.totalorder %s19_s19, %s229_s27  ;;  %p235_p5 = scmp.lt.s32.totalorder %s229_s27, %s229_s27 }
   0xc   :  { %p236_p6 = por %p235_p5, %p234_p4 }
   0xe   :  { %p237_p7 = pnand %p236_p6, %p230_p3 }
  0x10   :  { %240 = shalt.err (!%p237_p7)
}
  0x11   :  { %s292_s28 = smov 128   ;;  %s293_s29 = smov 8  }
  0x12   :  { %24 = dma.hbm_to_vmem [thread:$0]  %s381_s0, 256, %s19_s19, [#allocation3], %s292_s28, %s292_s28, %s293_s29  }
  0x13   :  { %s294_s7 = smov [#allocation5]   ;;  %s241_s11 = scalar_lea.hbm %s382_s1, 256 }
  0x14   :  { %s30_s8 = sshll.u32 %s294_s7, 4  ;;  %p242_p8 = scmp.ne.s32.totalorder %s382_s1, %s241_s11  ;;  %s31_s8 = int_to_ptr.vmem [resolvable:$true] %s30_s8 }
  0x15   :  { %p245_p9 = scmp.lt.u32.totalorder %s241_s11, %s382_s1 }
  0x17   :  { %p247_p10 = pnand %p245_p9, %p242_p8 }
  0x19   :  { %250 = shalt.err (!%p247_p10)
}
  0x1a   :  { %s251_s16 = scalar_lea.vmem %s31_s8, 256  ;;  %p256_p12 = scmp.lt.s32.totalorder %s31_s8, %s31_s8 }
  0x1b   :  { %p252_p11 = scmp.ne.s32.totalorder %s31_s8, %s251_s16  ;;  %p257_p13 = scmp.lt.s32.totalorder %s251_s16, %s251_s16 }
  0x1d   :  { %p258_p0 = por %p257_p13, %p256_p12 }
  0x1f   :  { %p259_p1 = pnand %p258_p0, %p252_p11 }
  0x21   :  { %262 = shalt.err (!%p259_p1)
}
  0x22   :  { %s295_s0 = smov 64   ;;  %s296_s17 = smov 4  }
  0x23   :  { %36 = dma.hbm_to_vmem [thread:$0]  %s382_s1, 256, %s31_s8, [#allocation6], %s295_s0, %s295_s0, %s296_s17  }
  0x24   :  { %285 = dma.done.wait [#allocation3], 256  }
  0x25   :  { %286 = vsyncadd [#allocation3], 4294967040 }
  0x26   :  { %287 = dma.done.wait [#allocation6], 256  }
  0x27   :  { %288 = vsyncadd [#allocation6], 4294967040  ;;  %v297_v0 = vmov 0.0   ;;  %vm298_vm0 = vmmov 0   ;;  %v213_v1 = vld [vmem:[#allocation5] sm:$0xff]   ;;  %v214_v2 = vld [vmem:[#allocation5 + $0x8] sm:$0xff]  }
  0x28   :  { %196 = vmatprep.subr.bf16.mxu0 %v297_v0  ;;  %200 = vmatprep.mubr.msk.bf16.mxu0 %vm298_vm0, %v297_v0  ;;  %v50_v3 = vld [vmem:[#allocation2] sm:$0xff]  ;;  %v51_v4 = vld [vmem:[#allocation2 + $0x8] sm:$0xff]  ;;  %vm76_vm1 = vcmask 261120   ;;  %s299_s24 = smov [#allocation7]  }
  0x29   :  { %197 = vmatpush3.bf16.msra.mxu0 %v213_v1  ;;  %v52_v5 = vpack.c.bf16 %v51_v4, %v50_v3  ;;  %v187_v6 = vld [vmem:[%s383_s2] ss:$0 sm:$0xff]  ;;  %s174_s25 = sshll.u32 %s299_s24, 4  ;;  %s175_s25 = int_to_ptr.vmem [resolvable:$true] %s174_s25 }
  0x2a   :  { %198 = vmatprep.subr.bf16.mxu0 %v297_v0  ;;  %v191_v33 = vld [vmem:[%s384_s3] ss:$0 sm:$0xff]  ;;  %s263_s26 = scalar_lea.vmem %s175_s25, 256  ;;  %p268_p3 = scmp.lt.s32.totalorder %s175_s25, %s175_s25 }
  0x2b   :  { %v192_v35 = vld [vmem:[%s385_s4] ss:$0 sm:$0xff]  ;;  %p264_p2 = scmp.ne.s32.totalorder %s175_s25, %s263_s26  ;;  %p269_p4 = scmp.lt.s32.totalorder %s263_s26, %s263_s26 }
  0x2d   :  { %199 = vmatpush3.bf16.msra.mxu0 %v214_v2  ;;  %p270_p5 = por %p269_p4, %p268_p3 }
  0x2f   :  { %p271_p6 = pnand %p270_p5, %p264_p2 }
  0x30   :  { %201 = vmatmul.mubr.msk.bf16.vlgmr.msra.gmra.mrb[0].mxu0 %vm76_vm1, %v52_v5 }
 0x103   :  { %v114_v7 = vpop.f32.mrb[0].mxu0 }
 0x104   :  { %v115_v8 = vadd.f32 %v187_v6, %v114_v7  ;;  %v202_v9 = vpop.f32.mrb[1].mxu0 }
 0x105   :  { %v117_v10 = vpop.f32.mrb[2].mxu0 }
 0x106   :  { %v118_v11 = vadd.f32 %v187_v6, %v117_v10  ;;  %123 = vadd.xlane.f32.xlu0 %v115_v8  ;;  %v203_v12 = vpop.f32.mrb[3].mxu0  ;;  %v127_v13 = vmul.f32 %v115_v8, %v115_v8 }
 0x108   :  { %129 = vadd.xlane.f32.xlu1 %v127_v13  ;;  %v128_v14 = vmul.f32 %v118_v11, %v118_v11 }
 0x10a   :  { %125 = vadd.xlane.f32.xlu0 %v118_v11 }
 0x10c   :  { %131 = vadd.xlane.f32.xlu1 %v128_v14 }
 0x193   :  { %v124_v15 = vpop.xlane.xlu0 %123 }
 0x194   :  { %v133_v16 = vmul.f32 0.03125, %v124_v15 }
 0x195   :  { %v130_v17 = vpop.xlane.xlu1 %129 }
 0x196   :  { %v137_v18 = vmul.f32 %v133_v16, %v133_v16  ;;  %v135_v19 = vmul.f32 0.03125, %v130_v17  ;;  %v143_v31 = vsub.f32 %v115_v8, %v133_v16 }
 0x197   :  { %v126_v20 = vpop.xlane.xlu0 %125 }
 0x198   :  { %v139_v21 = vsub.f32 %v135_v19, %v137_v18  ;;  %v134_v22 = vmul.f32 0.03125, %v126_v20 }
 0x199   :  { %v132_v23 = vpop.xlane.xlu1 %131 }
 0x19a   :  { %v141_v24 = vmax.f32 %v139_v21, 0.0  ;;  %v138_v25 = vmul.f32 %v134_v22, %v134_v22  ;;  %v136_v26 = vmul.f32 0.03125, %v132_v23  ;;  %v144_v36 = vsub.f32 %v118_v11, %v134_v22 }
 0x19c   :  { %v145_v27 = vadd.f32 1e-05, %v141_v24  ;;  %v140_v28 = vsub.f32 %v136_v26, %v138_v25 }
 0x19e   :  { %215 = vrsqrt.f32 %v145_v27  ;;  %v142_v29 = vmax.f32 %v140_v28, 0.0 }
 0x1a0   :  { %v146_v30 = vadd.f32 1e-05, %v142_v29 }
 0x1a2   :  { %217 = vrsqrt.f32 %v146_v30 }
 0x1a8   :  { %v216_v32 = vpop.eup %215 }
 0x1a9   :  { %v149_v34 = vmul.f32 %v216_v32, %v143_v31 }
 0x1ab   :  { %v157_v37 = vmul.f32 %v191_v33, %v149_v34 }
 0x1ac   :  { %v218_v38 = vpop.eup %217 }
 0x1ad   :  { %v150_v39 = vmul.f32 %v218_v38, %v144_v36  ;;  %v165_v40 = vadd.f32 %v192_v35, %v157_v37 }
 0x1af   :  { %v158_v41 = vmul.f32 %v191_v33, %v150_v39  ;;  %167 = vst [vmem:[#allocation7] sm:$0xff] %v165_v40 }
 0x1b1   :  { %v166_v42 = vadd.f32 %v192_v35, %v158_v41 }
 0x1b3   :  { %168 = vst [vmem:[#allocation7 + $0x8] sm:$0xff] %v166_v42 }
 0x1b4   :  { %274 = shalt.err (!%p271_p6)
}
 0x1b5   :  { %s275_s27 = scalar_lea.hbm %s386_s5, 256 }
 0x1b6   :  { %p276_p7 = scmp.ne.s32.totalorder %s386_s5, %s275_s27  ;;  %p279_p8 = scmp.lt.u32.totalorder %s275_s27, %s386_s5 }
 0x1b8   :  { %p281_p9 = pnand %p279_p8, %p276_p7 }
 0x1ba   :  { %284 = shalt.err (!%p281_p9)
}
 0x1bb   :  { %180 = dma.vmem_to_hbm [thread:$0]  %s175_s25, 256, %s386_s5, [#allocation4], %s292_s28, %s292_s28, %s293_s29  }
 0x1bc   :  { %289 = dma.done.wait [#allocation4], 256  }
 0x1bd   :  { %290 = vsyncadd [#allocation4], 4294967040 }
 0x1be   :  { %184 = vsyncpa [#allocation3], 1 }
 0x1bf   :  { %185 = vsyncpa [#allocation6], 1 }
 0x1c0   :  { %186 = vsyncpa [#allocation4], 1 }

// kernel: tpu_custom_call.1
= control target key start
LH: loop header
LB: loop body
LE: loop exit
PB: predicated region body
PF: predicated region fallthrough
CT: control target
= control target key end

     0   :  { %10 = vsyncpa [#allocation3], 0  ;;  %s381_s0 = inlined_call_operand.hbm [shape: f32[16,32], index: 0, kind: input, shape index: {}]   ;;  %s382_s1 = inlined_call_operand.hbm [shape: bf16[32,128], index: 1, kind: input, shape index: {}]   ;;  %s383_s2 = inlined_call_operand.vmem [shape: f32[1,128], index: 2, kind: input, shape index: {}]   ;;  %s384_s3 = inlined_call_operand.vmem [shape: f32[1,128], index: 3, kind: input, shape index: {}]   ;;  %s385_s4 = inlined_call_operand.vmem [shape: f32[1,128], index: 4, kind: input, shape index: {}]   ;;  %s386_s5 = inlined_call_operand.hbm [shape: f32[16,128], index: 5, kind: output, shape index: {}]  }
   0x1   :  { %11 = vsyncpa [#allocation6], 0 }
   0x2   :  { %12 = vsyncpa [#allocation4], 0  ;;  %s291_s18 = smov [#allocation2]   ;;  %s219_s22 = scalar_lea.hbm %s381_s0, 256 }
   0x3   :  { %s18_s19 = sshll.u32 %s291_s18, 4  ;;  %p220_p0 = scmp.ne.s32.totalorder %s381_s0, %s219_s22  ;;  %s19_s19 = int_to_ptr.vmem [resolvable:$true] %s18_s19 }
   0x4   :  { %p223_p1 = scmp.lt.u32.totalorder %s219_s22, %s381_s0 }
   0x6   :  { %p225_p2 = pnand %p223_p1, %p220_p0 }
   0x8   :  { %228 = shalt.err (!%p225_p2)
}
   0x9   :  { %s229_s27 = scalar_lea.vmem %s19_s19, 256  ;;  %p234_p4 = scmp.lt.s32.totalorder %s19_s19, %s19_s19 }
   0xa   :  { %p230_p3 = scmp.ne.s32.totalorder %s19_s19, %s229_s27  ;;  %p235_p5 = scmp.lt.s32.totalorder %s229_s27, %s229_s27 }
   0xc   :  { %p236_p6 = por %p235_p5, %p234_p4 }
   0xe   :  { %p237_p7 = pnand %p236_p6, %p230_p3 }
  0x10   :  { %240 = shalt.err (!%p237_p7)
}
  0x11   :  { %s292_s28 = smov 128   ;;  %s293_s29 = smov 8  }
  0x12   :  { %24 = dma.hbm_to_vmem [thread:$0]  %s381_s0, 256, %s19_s19, [#allocation3], %s292_s28, %s292_s28, %s293_s29  }
  0x13   :  { %s294_s7 = smov [#allocation5]   ;;  %s241_s11 = scalar_lea.hbm %s382_s1, 256 }
  0x14   :  { %s30_s8 = sshll.u32 %s294_s7, 4  ;;  %p242_p8 = scmp.ne.s32.totalorder %s382_s1, %s241_s11  ;;  %s31_s8 = int_to_ptr.vmem [resolvable:$true] %s30_s8 }
  0x15   :  { %p245_p9 = scmp.lt.u32.totalorder %s241_s11, %s382_s1 }
  0x17   :  { %p247_p10 = pnand %p245_p9, %p242_p8 }
  0x19   :  { %250 = shalt.err (!%p247_p10)
}
  0x1a   :  { %s251_s16 = scalar_lea.vmem %s31_s8, 256  ;;  %p256_p12 = scmp.lt.s32.totalorder %s31_s8, %s31_s8 }
  0x1b   :  { %p252_p11 = scmp.ne.s32.totalorder %s31_s8, %s251_s16  ;;  %p257_p13 = scmp.lt.s32.totalorder %s251_s16, %s251_s16 }
  0x1d   :  { %p258_p0 = por %p257_p13, %p256_p12 }
  0x1f   :  { %p259_p1 = pnand %p258_p0, %p252_p11 }
  0x21   :  { %262 = shalt.err (!%p259_p1)
}
  0x22   :  { %s295_s0 = smov 64   ;;  %s296_s17 = smov 4  }
  0x23   :  { %36 = dma.hbm_to_vmem [thread:$0]  %s382_s1, 256, %s31_s8, [#allocation6], %s295_s0, %s295_s0, %s296_s17  }
  0x24   :  { %285 = dma.done.wait [#allocation3], 256  }
  0x25   :  { %286 = vsyncadd [#allocation3], 4294967040 }
  0x26   :  { %287 = dma.done.wait [#allocation6], 256  }
  0x27   :  { %288 = vsyncadd [#allocation6], 4294967040  ;;  %v297_v0 = vmov 0.0   ;;  %vm298_vm0 = vmmov 0   ;;  %v213_v1 = vld [vmem:[#allocation5] sm:$0xff]   ;;  %v214_v2 = vld [vmem:[#allocation5 + $0x8] sm:$0xff]  }
  0x28   :  { %196 = vmatprep.subr.bf16.mxu0 %v297_v0  ;;  %200 = vmatprep.mubr.msk.bf16.mxu0 %vm298_vm0, %v297_v0  ;;  %v50_v3 = vld [vmem:[#allocation2] sm:$0xff]  ;;  %v51_v4 = vld [vmem:[#allocation2 + $0x8] sm:$0xff]  ;;  %vm76_vm1 = vcmask 261120   ;;  %s299_s24 = smov [#allocation7]  }
  0x29   :  { %197 = vmatpush3.bf16.msra.mxu0 %v213_v1  ;;  %v52_v5 = vpack.c.bf16 %v51_v4, %v50_v3  ;;  %v187_v6 = vld [vmem:[%s383_s2] ss:$0 sm:$0xff]  ;;  %s174_s25 = sshll.u32 %s299_s24, 4  ;;  %s175_s25 = int_to_ptr.vmem [resolvable:$true] %s174_s25 }
  0x2a   :  { %198 = vmatprep.subr.bf16.mxu0 %v297_v0  ;;  %v191_v33 = vld [vmem:[%s384_s3] ss:$0 sm:$0xff]  ;;  %s263_s26 = scalar_lea.vmem %s175_s25, 256  ;;  %p268_p3 = scmp.lt.s32.totalorder %s175_s25, %s175_s25 }
  0x2b   :  { %v192_v35 = vld [vmem:[%s385_s4] ss:$0 sm:$0xff]  ;;  %p264_p2 = scmp.ne.s32.totalorder %s175_s25, %s263_s26  ;;  %p269_p4 = scmp.lt.s32.totalorder %s263_s26, %s263_s26 }
  0x2d   :  { %199 = vmatpush3.bf16.msra.mxu0 %v214_v2  ;;  %p270_p5 = por %p269_p4, %p268_p3 }
  0x2f   :  { %p271_p6 = pnand %p270_p5, %p264_p2 }
  0x30   :  { %201 = vmatmul.mubr.msk.bf16.vlgmr.msra.gmra.mrb[0].mxu0 %vm76_vm1, %v52_v5 }
 0x103   :  { %v114_v7 = vpop.f32.mrb[0].mxu0 }
 0x104   :  { %v115_v8 = vadd.f32 %v187_v6, %v114_v7  ;;  %v202_v9 = vpop.f32.mrb[1].mxu0 }
 0x105   :  { %v117_v10 = vpop.f32.mrb[2].mxu0 }
 0x106   :  { %v118_v11 = vadd.f32 %v187_v6, %v117_v10  ;;  %123 = vadd.xlane.f32.xlu0 %v115_v8  ;;  %v203_v12 = vpop.f32.mrb[3].mxu0  ;;  %v127_v13 = vmul.f32 %v115_v8, %v115_v8 }
 0x108   :  { %129 = vadd.xlane.f32.xlu1 %v127_v13  ;;  %v128_v14 = vmul.f32 %v118_v11, %v118_v11 }
 0x10a   :  { %125 = vadd.xlane.f32.xlu0 %v118_v11 }
 0x10c   :  { %131 = vadd.xlane.f32.xlu1 %v128_v14 }
 0x193   :  { %v124_v15 = vpop.xlane.xlu0 %123 }
 0x194   :  { %v133_v16 = vmul.f32 0.03125, %v124_v15 }
 0x195   :  { %v130_v17 = vpop.xlane.xlu1 %129 }
 0x196   :  { %v137_v18 = vmul.f32 %v133_v16, %v133_v16  ;;  %v135_v19 = vmul.f32 0.03125, %v130_v17  ;;  %v143_v31 = vsub.f32 %v115_v8, %v133_v16 }
 0x197   :  { %v126_v20 = vpop.xlane.xlu0 %125 }
 0x198   :  { %v139_v21 = vsub.f32 %v135_v19, %v137_v18  ;;  %v134_v22 = vmul.f32 0.03125, %v126_v20 }
 0x199   :  { %v132_v23 = vpop.xlane.xlu1 %131 }
 0x19a   :  { %v141_v24 = vmax.f32 %v139_v21, 0.0  ;;  %v138_v25 = vmul.f32 %v134_v22, %v134_v22  ;;  %v136_v26 = vmul.f32 0.03125, %v132_v23  ;;  %v144_v36 = vsub.f32 %v118_v11, %v134_v22 }
 0x19c   :  { %v145_v27 = vadd.f32 1e-05, %v141_v24  ;;  %v140_v28 = vsub.f32 %v136_v26, %v138_v25 }
 0x19e   :  { %215 = vrsqrt.f32 %v145_v27  ;;  %v142_v29 = vmax.f32 %v140_v28, 0.0 }
 0x1a0   :  { %v146_v30 = vadd.f32 1e-05, %v142_v29 }
 0x1a2   :  { %217 = vrsqrt.f32 %v146_v30 }
 0x1a8   :  { %v216_v32 = vpop.eup %215 }
 0x1a9   :  { %v149_v34 = vmul.f32 %v216_v32, %v143_v31 }
 0x1ab   :  { %v157_v37 = vmul.f32 %v191_v33, %v149_v34 }
 0x1ac   :  { %v218_v38 = vpop.eup %217 }
 0x1ad   :  { %v150_v39 = vmul.f32 %v218_v38, %v144_v36  ;;  %v165_v40 = vadd.f32 %v192_v35, %v157_v37 }
 0x1af   :  { %v158_v41 = vmul.f32 %v191_v33, %v150_v39  ;;  %167 = vst [vmem:[#allocation7] sm:$0xff] %v165_v40 }
 0x1b1   :  { %v166_v42 = vadd.f32 %v192_v35, %v158_v41 }
 0x1b3   :  { %168 = vst [vmem:[#allocation7 + $0x8] sm:$0xff] %v166_v42 }
 0x1b4   :  { %274 = shalt.err (!%p271_p6)
}
 0x1b5   :  { %s275_s27 = scalar_lea.hbm %s386_s5, 256 }
 0x1b6   :  { %p276_p7 = scmp.ne.s32.totalorder %s386_s5, %s275_s27  ;;  %p279_p8 = scmp.lt.u32.totalorder %s275_s27, %s386_s5 }
 0x1b8   :  { %p281_p9 = pnand %p279_p8, %p276_p7 }
 0x1ba   :  { %284 = shalt.err (!%p281_p9)
}
 0x1bb   :  { %180 = dma.vmem_to_hbm [thread:$0]  %s175_s25, 256, %s386_s5, [#allocation4], %s292_s28, %s292_s28, %s293_s29  }
 0x1bc   :  { %289 = dma.done.wait [#allocation4], 256  }
 0x1bd   :  { %290 = vsyncadd [#allocation4], 4294967040 }
 0x1be   :  { %184 = vsyncpa [#allocation3], 1 }
 0x1bf   :  { %185 = vsyncpa [#allocation6], 1 }
 0x1c0   :  { %186 = vsyncpa [#allocation4], 1 }

</bundles_post_ra>
